<compile_context>
chip_gen: v6e
topology: v6e:2x2x1
jax: 0.10.0
libtpu: 0.0.40
codegen_flags: <defaults>
</compile_context>

<pallas_src>
import jax
import jax.numpy as jnp
from jax.experimental import pallas as pl
from jax.experimental.pallas import tpu as pltpu

NUM_OPS = 8
OP_NAMES = ['EDA_WordDelete', 'EDA_WordSwap', 'EDA_WordDelete_Swap', 'Cbert',
            'BackTrans', 'RandomMask', 'R3F', 'Cutoff']

MODE_EVAL = 0
MODE_TRAIN = 1

# Power-of-two assumption for the mask-based randint (uniformity requires it).
assert NUM_OPS & (NUM_OPS - 1) == 0, "NUM_OPS must be a power of two for mask-based randint"


# --------------------------------------------------------------------------
# Single merged sampling kernel (eval + train), all scalar ops in SMEM.
#
#   train branch: torch.randint(0, NUM_OPS, (1,))
#     splitmix-style 32-bit integer hash of the caller-provided seed, masked to
#     [0, NUM_OPS).  The caller must advance the seed every step for fresh draws.
#     TODO(synk): once per-element randomness (RandomMask / Cutoff / R3F masks)
#     moves into a real dispatch kernel, switch this draw to
#     pltpu.prng_seed + pltpu.prng_random_bits on HW (hash kept for portability).
#
#   eval branch: Categorical(self._weights).sample()
#     inverse-CDF against the precomputed prefix sum held in SMEM:
#       idx = #{k < NUM_OPS-1 : cdf[k] <= u * cdf[-1]}
#     counting only the first NUM_OPS-1 entries is exactly the clamped count
#     min(#{k : cdf[k] <= thresh}, NUM_OPS-1), so no explicit clamp is needed.
# --------------------------------------------------------------------------
def _sample_idx_kernel(mode_ref, u_ref, seed_ref, cdf_ref, idx_ref):
    @pl.when(mode_ref[0] == MODE_TRAIN)
    def _train():
        x = seed_ref[0].astype(jnp.uint32)
        x = x + jnp.uint32(0x9E3779B9)
        x = x ^ (x >> jnp.uint32(16))
        x = x * jnp.uint32(0x21F0AAAD)
        x = x ^ (x >> jnp.uint32(15))
        x = x * jnp.uint32(0x735A2D97)
        x = x ^ (x >> jnp.uint32(15))
        idx_ref[0] = jnp.bitwise_and(x, jnp.uint32(NUM_OPS - 1)).astype(jnp.int32)

    @pl.when(mode_ref[0] != MODE_TRAIN)
    def _eval():
        thresh = u_ref[0] * cdf_ref[NUM_OPS - 1]      # u in [0,1) scaled to total mass
        cnt = jnp.int32(0)
        for k in range(NUM_OPS - 1):                  # unrolled scalar compares
            cnt = cnt + (cdf_ref[k] <= thresh).astype(jnp.int32)
        idx_ref[0] = cnt


# --------------------------------------------------------------------------
# Python wrapper mirroring RandomAugment
# --------------------------------------------------------------------------
class RandomAugmentPallas:
    def __init__(self):
        # nn.Parameter(torch.ones(len(self.operations))) -> deterministic ones.
        self._weights = jnp.ones((NUM_OPS,), dtype=jnp.float32)
        self.op_names = OP_NAMES
        self.training = False
        self._refresh_cdf()
        # TODO(synk): create_op_records / update_op_records do JSON file I/O -> skipped.

        # One executable for both modes; all operands + output live in SMEM.
        self._sample = pl.pallas_call(
            _sample_idx_kernel,
            out_shape=jax.ShapeDtypeStruct((1,), jnp.int32),
            in_specs=[
                pl.BlockSpec(memory_space=pltpu.MemorySpace.SMEM),  # mode (1,) i32
                pl.BlockSpec(memory_space=pltpu.MemorySpace.SMEM),  # u    (1,) f32
                pl.BlockSpec(memory_space=pltpu.MemorySpace.SMEM),  # seed (1,) i32
                pl.BlockSpec(memory_space=pltpu.MemorySpace.SMEM),  # cdf  (8,) f32
            ],
            out_specs=pl.BlockSpec(memory_space=pltpu.MemorySpace.SMEM),
            cost_estimate=pl.CostEstimate(flops=32, transcendentals=0,
                                          bytes_accessed=64),
        )

    def _refresh_cdf(self):
        # Categorical(probs) requires non-negative masses; the inverse-CDF uses
        # the unnormalized prefix sum so normalization is implicit.  Recompute
        # only when the (learned) weights change.
        w = jnp.maximum(self._weights, 0.0)
        self._cdf = jnp.cumsum(w).astype(jnp.float32)

    def set_weights(self, weights):
        self._weights = jnp.asarray(weights, jnp.float32).reshape(NUM_OPS)
        self._refresh_cdf()

    def sample_idx(self, *, u=None, seed=None):
        mode = jnp.array([MODE_TRAIN if self.training else MODE_EVAL], jnp.int32)
        if u is None:
            u = jnp.zeros((1,), jnp.float32)
        if seed is None:
            seed = jnp.zeros((1,), jnp.int32)
        return self._sample(mode, u, seed, self._cdf)

    def __call__(self, input_ids, input_emb, *, u=None, seed=None):
        idx = self.sample_idx(u=u, seed=seed)   # stays on device, no host read
        # TODO(synk): the 8 augmentation ops (EDA_WordDelete, EDA_WordSwap,
        # EDA_WordDelete_Swap, Cbert, BackTrans, RandomMask, R3F, Cutoff) are
        # external modules with no definition in the source.  Once they exist,
        # implement a single dispatch kernel over input_emb that consumes idx /
        # u / seed / weights via PrefetchScalarGridSpec scalar prefetch, with:
        #   - lane-dense out_specs (fold H=32 into a >=128-wide last block dim),
        #   - input_output_aliases for the in-place-ish ops (RandomMask, Cutoff,
        #     R3F noise add) to halve HBM traffic,
        #   - dimension_semantics=("parallel", ...) on batch/seq grid axes,
        #   - tiles sized for v7x's 64 MiB VMEM / v5e's 16 MiB scoped default
        #     (raise vmem_limit_bytes as needed).
        # Until then the tensors are returned zero-copy (no pass-through DMA).
        return idx, input_ids, input_emb


# --------------------------------------------------------------------------
# Test harness (host reads below are test-only; the forward path never syncs).
# --------------------------------------------------------------------------
if __name__ == "__main__":
    key = jax.random.PRNGKey(0)
    k_ids, k_emb, k_u = jax.random.split(key, 3)

    B, S, H = 2, 8, 32
    input_ids = jax.random.randint(k_ids, (B, S), 0, 1000, dtype=jnp.int32)
    input_emb = jax.random.normal(k_emb, (B, S, H), dtype=jnp.float32)

    module = RandomAugmentPallas()

    # ---- eval-mode path: Categorical sample over the learned weights --------
    module.training = False
    u = jax.random.uniform(k_u, (1,), dtype=jnp.float32)
    idx_eval, ids_out, emb_out = module(input_ids, input_emb, u=u)

    # ---- train-mode path: uniform randint from a hashed seed ----------------
    module.training = True
    seed = jnp.array([17], dtype=jnp.int32)
    idx_train, ids_out_t, emb_out_t = module(input_ids, input_emb, seed=seed)

    jax.block_until_ready((idx_eval, idx_train))

    # ---- on-device references (same semantics as the kernel) ----------------
    w = jnp.ones((NUM_OPS,), jnp.float32)
    cdf = jnp.cumsum(w)
    ref_eval = jnp.sum((cdf[: NUM_OPS - 1] <= u[0] * cdf[-1]).astype(jnp.int32))

    def _splitmix_ref(s):
        x = s.astype(jnp.uint32)
        x = x + jnp.uint32(0x9E3779B9)
        x = x ^ (x >> jnp.uint32(16))
        x = x * jnp.uint32(0x21F0AAAD)
        x = x ^ (x >> jnp.uint32(15))
        x = x * jnp.uint32(0x735A2D97)
        x = x ^ (x >> jnp.uint32(15))
        return jnp.bitwise_and(x, jnp.uint32(NUM_OPS - 1)).astype(jnp.int32)

    ref_train = _splitmix_ref(seed[0])

    ok = jnp.logical_and(
        jnp.logical_and(
            jnp.logical_and(idx_eval[0] >= 0, idx_eval[0] < NUM_OPS),
            jnp.logical_and(idx_train[0] >= 0, idx_train[0] < NUM_OPS),
        ),
        jnp.logical_and(idx_eval[0] == ref_eval, idx_train[0] == ref_train),
    )

    # single host read for the whole test
    assert bool(ok), (idx_eval, ref_eval, idx_train, ref_train)

    # pass-through is zero-copy and unchanged
    assert ids_out is input_ids and emb_out is input_emb
    assert jnp.array_equal(ids_out_t, input_ids)
    assert jnp.allclose(emb_out_t, input_emb)

    print("KERNEL_OK")
</pallas_src>

<mosaic_0001>
module attributes {stable_mosaic.version = 11 : i64} {
  func.func @_sample_idx_kernel(%arg0: memref<1xi32, #tpu.memory_space<smem>>, %arg1: memref<1xf32, #tpu.memory_space<smem>>, %arg2: memref<1xi32, #tpu.memory_space<smem>>, %arg3: memref<8xf32, #tpu.memory_space<smem>>, %arg4: memref<1xi32, #tpu.memory_space<smem>>) attributes {dimension_semantics = [], scalar_prefetch = 0 : i64, scratch_operands = 0 : i64, tpu.core_type = #tpu.core_type<tc>} {
    %c0 = arith.constant 0 : index
    %0 = memref.load %arg0[%c0] : memref<1xi32, #tpu.memory_space<smem>>
    %c1_i32 = arith.constant 1 : i32
    %1 = arith.cmpi eq, %0, %c1_i32 : i32
    %2 = arith.extui %1 : i1 to i32
    %c0_i32 = arith.constant 0 : i32
    %3 = arith.cmpi ne, %2, %c0_i32 : i32
    scf.if %3 {
      %c0_3 = arith.constant 0 : index
      %8 = memref.load %arg2[%c0_3] : memref<1xi32, #tpu.memory_space<smem>>
      %c-1640531527_i32 = arith.constant -1640531527 : i32
      %9 = arith.addi %8, %c-1640531527_i32 : i32
      %c16_i32 = arith.constant 16 : i32
      %10 = arith.shrui %9, %c16_i32 : i32
      %11 = arith.xori %9, %10 : i32
      %c569420461_i32 = arith.constant 569420461 : i32
      %12 = arith.muli %11, %c569420461_i32 : i32
      %c15_i32 = arith.constant 15 : i32
      %13 = arith.shrui %12, %c15_i32 : i32
      %14 = arith.xori %12, %13 : i32
      %c1935289751_i32 = arith.constant 1935289751 : i32
      %15 = arith.muli %14, %c1935289751_i32 : i32
      %c15_i32_4 = arith.constant 15 : i32
      %16 = arith.shrui %15, %c15_i32_4 : i32
      %17 = arith.xori %15, %16 : i32
      %c7_i32 = arith.constant 7 : i32
      %18 = arith.andi %17, %c7_i32 : i32
      %c0_5 = arith.constant 0 : index
      %19 = memref.load %arg4[%c0_5] : memref<1xi32, #tpu.memory_space<smem>>
      memref.store %18, %arg4[%c0_5] : memref<1xi32, #tpu.memory_space<smem>>
    } else {
    }
    %c0_0 = arith.constant 0 : index
    %4 = memref.load %arg0[%c0_0] : memref<1xi32, #tpu.memory_space<smem>>
    %c1_i32_1 = arith.constant 1 : i32
    %5 = arith.cmpi ne, %4, %c1_i32_1 : i32
    %6 = arith.extui %5 : i1 to i32
    %c0_i32_2 = arith.constant 0 : i32
    %7 = arith.cmpi ne, %6, %c0_i32_2 : i32
    scf.if %7 {
      %c0_3 = arith.constant 0 : index
      %8 = memref.load %arg1[%c0_3] : memref<1xf32, #tpu.memory_space<smem>>
      %c7 = arith.constant 7 : index
      %9 = memref.load %arg3[%c7] : memref<8xf32, #tpu.memory_space<smem>>
      %10 = arith.mulf %8, %9 : f32
      %c0_4 = arith.constant 0 : index
      %11 = memref.load %arg3[%c0_4] : memref<8xf32, #tpu.memory_space<smem>>
      %12 = arith.cmpf ole, %11, %10 : f32
      %13 = arith.extui %12 : i1 to i32
      %c0_i32_5 = arith.constant 0 : i32
      %14 = arith.addi %c0_i32_5, %13 : i32
      %c1 = arith.constant 1 : index
      %15 = memref.load %arg3[%c1] : memref<8xf32, #tpu.memory_space<smem>>
      %16 = arith.cmpf ole, %15, %10 : f32
      %17 = arith.extui %16 : i1 to i32
      %18 = arith.addi %14, %17 : i32
      %c2 = arith.constant 2 : index
      %19 = memref.load %arg3[%c2] : memref<8xf32, #tpu.memory_space<smem>>
      %20 = arith.cmpf ole, %19, %10 : f32
      %21 = arith.extui %20 : i1 to i32
      %22 = arith.addi %18, %21 : i32
      %c3 = arith.constant 3 : index
      %23 = memref.load %arg3[%c3] : memref<8xf32, #tpu.memory_space<smem>>
      %24 = arith.cmpf ole, %23, %10 : f32
      %25 = arith.extui %24 : i1 to i32
      %26 = arith.addi %22, %25 : i32
      %c4 = arith.constant 4 : index
      %27 = memref.load %arg3[%c4] : memref<8xf32, #tpu.memory_space<smem>>
      %28 = arith.cmpf ole, %27, %10 : f32
      %29 = arith.extui %28 : i1 to i32
      %30 = arith.addi %26, %29 : i32
      %c5 = arith.constant 5 : index
      %31 = memref.load %arg3[%c5] : memref<8xf32, #tpu.memory_space<smem>>
      %32 = arith.cmpf ole, %31, %10 : f32
      %33 = arith.extui %32 : i1 to i32
      %34 = arith.addi %30, %33 : i32
      %c6 = arith.constant 6 : index
      %35 = memref.load %arg3[%c6] : memref<8xf32, #tpu.memory_space<smem>>
      %36 = arith.cmpf ole, %35, %10 : f32
      %37 = arith.extui %36 : i1 to i32
      %38 = arith.addi %34, %37 : i32
      %c0_6 = arith.constant 0 : index
      %39 = memref.load %arg4[%c0_6] : memref<1xi32, #tpu.memory_space<smem>>
      memref.store %38, %arg4[%c0_6] : memref<1xi32, #tpu.memory_space<smem>>
    } else {
    }
    return
  }
}

</mosaic_0001>

<bundles_post_ra>
// kernel: tpu_custom_call.1
= control target key start
LH: loop header
LB: loop body
LE: loop exit
PB: predicated region body
PF: predicated region fallthrough
CT: control target
= control target key end

     0   :  { %s199_s0 = inlined_call_operand.<no memory space> [shape: s32[1], index: 0, kind: input, shape index: {}]   ;;  %s200_s1 = inlined_call_operand.<no memory space> [shape: f32[1], index: 1, kind: input, shape index: {}]   ;;  %s201_s2 = inlined_call_operand.<no memory space> [shape: s32[1], index: 2, kind: input, shape index: {}]   ;;  %s202_s3 = inlined_call_operand.vmem [shape: f32[8], index: 3, kind: input, shape index: {}]   ;;  %s203_s4 = inlined_call_operand.hbm [shape: s32[1], index: 4, kind: output, shape index: {}]  }
   0x1   :  { %9 = sst [smem:[#allocation2]] %s199_s0 }
   0x2   :  { %10 = sst [smem:[#allocation3]] %s200_s1 }
   0x3   :  { %11 = sst [smem:[#allocation4]] %s201_s2 }
   0x4   :  { %12 = vsyncpa [#allocation7], 0 }
   0x5   :  { %13 = vsyncpa [#allocation6], 0  ;;  %s26_s23 = sshll.u32 %s202_s3, 4  ;;  %s27_s23 = int_to_ptr.vmem [resolvable:$true] %s26_s23 }
   0x6   :  { %s120_s24 = scalar_lea.vmem %s27_s23, 16  ;;  %p125_p1 = scmp.lt.s32.totalorder %s27_s23, %s27_s23 }
   0x7   :  { %p121_p0 = scmp.ne.s32.totalorder %s27_s23, %s120_s24  ;;  %p126_p2 = scmp.lt.s32.totalorder %s120_s24, %s120_s24 }
   0x9   :  { %p127_p3 = por %p126_p2, %p125_p1 }
   0xb   :  { %p128_p4 = pnand %p127_p3, %p121_p0 }
   0xd   :  { %131 = shalt.err (!%p128_p4)
}
   0xe   :  { %s144_s0 = smov [#allocation5]  }
   0xf   :  { %29 = dma.vmem_to_smem %s27_s23, 16, %s144_s0, [#allocation7]  }
  0x10   :  { %140 = dma.done.wait [#allocation7], 16  }
  0x11   :  { %141 = vsyncadd [#allocation7], 4294967280 }
  0x12   :  { %33 = sfence }
  0x13   :  { %s183_s1 = sld [smem:[#allocation2]] }
  0x14   :  { %s39_s2 = sld [smem:[#allocation4]] }
  0x15   :  { %s57_s25 = sld [smem:[#allocation3]] }
  0x16   :  { %s105_s26 = sld [smem:[#allocation5 + $0x7]] }
  0x17   :  { %s60_s3 = sld [smem:[#allocation5]] }
  0x18   :  { %s106_s27 = sld [smem:[#allocation5 + $0x1]] }
  0x19   :  { %s107_s30 = sld [smem:[#allocation5 + $0x2]]  ;;  %p116_p6 = scmp.eq.s32.totalorder %s183_s1, 1 }
  0x1a   :  { %s40_s28 = sadd.s32 2654435769, %s39_s2  ;;  %s108_s8 = sld [smem:[#allocation5 + $0x3]] }
  0x1b   :  { %s41_s29 = sshrl.u32 %s40_s28, 16  ;;  %s109_s9 = sld [smem:[#allocation5 + $0x4]] }
  0x1c   :  { %s42_s5 = sxor.u32 %s41_s29, %s40_s28  ;;  %s185_s6 = smul.f32 %s105_s26, %s57_s25 }
  0x1d   :  { %s43_s7 = smul.u32 569420461, %s42_s5  ;;  %s110_s13 = sld [smem:[#allocation5 + $0x5]] }
  0x1e   :  { %p61_p5 = scmp.le.f32.partialorder %s60_s3, %s185_s6  ;;  %p64_p7 = scmp.le.f32.partialorder %s106_s27, %s185_s6 }
  0x1f   :  { %s44_s10 = sshrl.u32 %s43_s7, 15  ;;  %p68_p8 = scmp.le.f32.partialorder %s107_s30, %s185_s6 }
  0x20   :  { %s45_s11 = sxor.u32 %s44_s10, %s43_s7  ;;  %s111_s17 = sld [smem:[#allocation5 + $0x6]] }
  0x21   :  { %s46_s12 = smul.u32 1935289751, %s45_s11  ;;  %p72_p9 = scmp.le.f32.partialorder %s108_s8, %s185_s6 }
  0x22   :  { %s62_s14 = scalar_select %p61_p5, 1, 0 }
  0x23   :  { %s47_s15 = sshrl.u32 %s46_s12, 15  ;;  %p76_p10 = scmp.le.f32.partialorder %s109_s9, %s185_s6 }
  0x24   :  { %s48_s16 = sxor.u32 %s47_s15, %s46_s12  ;;  %p80_p11 = scmp.le.f32.partialorder %s110_s13, %s185_s6 }
  0x25   :  { %s49_s18 = sand.u32 7, %s48_s16  ;;  %p103_p13 = scmp.ne.s32.totalorder %s183_s1, 1 }
  0x26   :  { %113 = sst [smem:[#allocation8]] (%p116_p6), %s49_s18  ;;  %p84_p12 = scmp.le.f32.partialorder %s111_s17, %s185_s6 }
  0x27   :  { %s65_s19 = scalar_select %p64_p7, 1, 0 }
  0x28   :  { %s69_s20 = scalar_select %p68_p8, 1, 0 }
  0x29   :  { %s66_s21 = sadd.s32 %s65_s19, %s62_s14  ;;  %s145_s28 = smov [#allocation8]  }
  0x2a   :  { %s70_s22 = sadd.s32 %s69_s20, %s66_s21 }
  0x2b   :  { %s73_s23 = scalar_select %p72_p9, 1, 0 }
  0x2c   :  { %s77_s24 = scalar_select %p76_p10, 1, 0 }
  0x2d   :  { %s74_s0 = sadd.s32 %s73_s23, %s70_s22 }
  0x2e   :  { %s78_s2 = sadd.s32 %s77_s24, %s74_s0 }
  0x2f   :  { %s81_s25 = scalar_select %p80_p11, 1, 0 }
  0x30   :  { %s85_s26 = scalar_select %p84_p12, 1, 0 }
  0x31   :  { %s82_s3 = sadd.s32 %s81_s25, %s78_s2 }
  0x32   :  { %s86_s27 = sadd.s32 %s85_s26, %s82_s3 }
  0x33   :  { %115 = sst [smem:[#allocation8]] (%p103_p13), %s86_s27 }
  0x34   :  { %96 = dma.smem_to_hbm %s145_s28, 16, %s203_s4, [#allocation6]  }
  0x35   :  { %142 = dma.done.wait [#allocation6], 16  }
  0x36   :  { %143 = vsyncadd [#allocation6], 4294967280 }
  0x37   :  { %100 = sfence }
  0x38   :  { %101 = vsyncpa [#allocation6], 1 }
  0x39   :  { %102 = vsyncpa [#allocation7], 1 }

</bundles_post_ra>
